<compile_context>
chip_gen: v5e
topology: v5e:2x2
jax: 0.10.0
libtpu: 0.0.40
codegen_flags: <defaults>
</compile_context>

<pallas_src>
import functools

import jax
import jax.numpy as jnp
from jax.experimental import pallas as pl
from jax.experimental.pallas import tpu as pltpu


def _ffn_kernel(x_ref, w1_ref, b1_ref, w2_ref, b2_ref, o_ref, acc_ref, *, activation):
    # x_ref:  (tm, d_model)   w1_ref: (d_model, tf)   b1_ref: (1, tf)
    # w2_ref: (tf, d_model)   b2_ref: (1, d_model)    o_ref:  (tm, d_model)
    # acc_ref: (tm, d_model) float32 accumulator, resident across the d_ff axis.
    k = pl.program_id(1)

    @pl.when(k == 0)
    def _():
        acc_ref[...] = jnp.zeros_like(acc_ref)

    x = x_ref[...]
    h = jnp.dot(x, w1_ref[...], preferred_element_type=jnp.float32) + b1_ref[...]
    if activation == "relu":
        h = jnp.maximum(h, 0.0)
    elif activation == "gelu":
        h = jax.nn.gelu(h)
    else:
        raise ValueError(f"unsupported activation: {activation}")
    # dropout: identity in eval mode.
    acc_ref[...] += jnp.dot(h.astype(w2_ref.dtype), w2_ref[...],
                            preferred_element_type=jnp.float32)

    @pl.when(k == pl.num_programs(1) - 1)
    def _():
        o_ref[...] = (acc_ref[...] + b2_ref[...]).astype(o_ref.dtype)


def _round_up(x, m):
    return ((x + m - 1) // m) * m


@functools.partial(jax.jit, static_argnames=("tm", "tf", "activation"))
def feed_forward(x, w1, b1, w2, b2, *, tm=256, tf=None, activation="relu"):
    """x: [..., d_model] -> [..., d_model].  Works for f32 or bf16 inputs/weights."""
    orig_shape = x.shape
    d_model = orig_shape[-1]
    d_ff = w1.shape[1]

    x2 = x.reshape(-1, d_model)
    M = x2.shape[0]

    # Row tile: large (256 default) to saturate the MXU and amortize per-grid-step overhead.
    # Pad M to a multiple of the tile instead of asserting divisibility.
    tm_eff = tm if M >= tm else _round_up(M, 8)
    M_pad = _round_up(M, tm_eff)
    if M_pad != M:
        x2 = jnp.pad(x2, ((0, M_pad - M), (0, 0)))

    # d_ff tile: largest of 512/256/128 that divides d_ff (lane-aligned), else full d_ff.
    if tf is None:
        tf_eff = d_ff
        for cand in (512, 256, 128):
            if d_ff % cand == 0:
                tf_eff = cand
                break
    else:
        assert d_ff % tf == 0, "tf must divide d_ff"
        tf_eff = tf

    b1_2 = b1.reshape(1, d_ff)
    b2_2 = b2.reshape(1, d_model)

    n_row_tiles = M_pad // tm_eff
    n_k_tiles = d_ff // tf_eff

    # Explicit VMEM budget: double-buffered x/out/w1/w2/bias tiles + f32 accumulator.
    dtype_bytes = x.dtype.itemsize
    vmem_bytes = (2 * (2 * tm_eff * d_model + 2 * d_model * tf_eff + tf_eff + d_model)
                  * dtype_bytes + tm_eff * d_model * 4)
    vmem_limit = int(min(max(1.5 * vmem_bytes, 16 << 20), 64 << 20))  # fits v5e/v6e/v7x

    flops = 4 * M_pad * d_model * d_ff  # two matmuls
    bytes_accessed = ((x2.size + M_pad * d_model) * dtype_bytes
                      + n_row_tiles * (w1.size + w2.size + d_ff + d_model) * dtype_bytes)

    kernel = functools.partial(_ffn_kernel, activation=activation)

    out = pl.pallas_call(
        kernel,
        out_shape=jax.ShapeDtypeStruct((M_pad, d_model), x.dtype),
        grid_spec=pltpu.PrefetchScalarGridSpec(
            num_scalar_prefetch=0,
            grid=(n_row_tiles, n_k_tiles),            # reduction (d_ff) axis last
            in_specs=[
                pl.BlockSpec((tm_eff, d_model), lambda i, k: (i, 0)),   # x tile
                pl.BlockSpec((d_model, tf_eff), lambda i, k: (0, k)),   # w1 column tile
                pl.BlockSpec((1, tf_eff), lambda i, k: (0, k)),         # b1 tile
                pl.BlockSpec((tf_eff, d_model), lambda i, k: (k, 0)),   # w2 row tile
                pl.BlockSpec((1, d_model), lambda i, k: (0, 0)),        # b2 (resident)
            ],
            out_specs=pl.BlockSpec((tm_eff, d_model), lambda i, k: (i, 0)),
            scratch_shapes=[pltpu.VMEM((tm_eff, d_model), jnp.float32)],
        ),
        compiler_params=pltpu.CompilerParams(
            dimension_semantics=("parallel", "arbitrary"),
            vmem_limit_bytes=vmem_limit,
        ),
        cost_estimate=pl.CostEstimate(
            flops=flops, transcendentals=0, bytes_accessed=bytes_accessed),
    )(x2, w1, b1_2, w2, b2_2)

    if M_pad != M:
        out = out[:M]
    return out.reshape(orig_shape)


def init_params(key, d_model, d_ff, dtype=jnp.float32):
    # Mimic nn.Linear's default init: U(-1/sqrt(fan_in), 1/sqrt(fan_in)).
    k1, k2, k3, k4 = jax.random.split(key, 4)
    lim1 = 1.0 / (d_model ** 0.5)
    lim2 = 1.0 / (d_ff ** 0.5)
    w1 = jax.random.uniform(k1, (d_model, d_ff), dtype, -lim1, lim1)
    b1 = jax.random.uniform(k2, (d_ff,), dtype, -lim1, lim1)
    w2 = jax.random.uniform(k3, (d_ff, d_model), dtype, -lim2, lim2)
    b2 = jax.random.uniform(k4, (d_model,), dtype, -lim2, lim2)
    return w1, b1, w2, b2


if __name__ == "__main__":
    key = jax.random.PRNGKey(0)
    kx, kp = jax.random.split(key)

    # Small but lane-dense shapes (d_model, d_ff multiples of 128).
    batch, seq, d_model, d_ff = 2, 8, 128, 512
    x = jax.random.normal(kx, (batch, seq, d_model), jnp.float32)
    w1, b1, w2, b2 = init_params(kp, d_model, d_ff)

    # tf=256 forces two d_ff reduction steps -> exercises the accumulator init/finalize path.
    y = feed_forward(x, w1, b1, w2, b2, tf=256)
    y = jax.block_until_ready(y)

    # Pure-JAX reference check (eval-mode dropout = identity, ReLU activation).
    h_ref = jnp.maximum(x @ w1 + b1, 0.0)
    y_ref = h_ref @ w2 + b2
    assert y.shape == x.shape
    assert jnp.allclose(y, y_ref, atol=1e-4, rtol=1e-4), float(jnp.max(jnp.abs(y - y_ref)))

    print("KERNEL_OK")
</pallas_src>

<mosaic_0001>
module attributes {stable_mosaic.version = 11 : i64} {
  func.func @_ffn_kernel(%arg0: i32, %arg1: i32, %arg2: memref<16x128xf32, #tpu.memory_space<vmem>>, %arg3: memref<128x256xf32, #tpu.memory_space<vmem>>, %arg4: memref<1x256xf32, #tpu.memory_space<vmem>>, %arg5: memref<256x128xf32, #tpu.memory_space<vmem>>, %arg6: memref<1x128xf32, #tpu.memory_space<vmem>>, %arg7: memref<16x128xf32, #tpu.memory_space<vmem>>, %arg8: memref<16x128xf32, #tpu.memory_space<vmem>>) attributes {dimension_semantics = [#tpu.dimension_semantics<parallel>, #tpu.dimension_semantics<arbitrary>], iteration_bounds = array<i64: 1, 2>, scalar_prefetch = 0 : i64, scratch_operands = 1 : i64, tpu.core_type = #tpu.core_type<tc>, window_params = [{transform_indices = @transform_0, window_bounds = array<i64: 16, 128>}, {transform_indices = @transform_1, window_bounds = array<i64: 128, 256>}, {transform_indices = @transform_2, window_bounds = array<i64: 1, 256>}, {transform_indices = @transform_3, window_bounds = array<i64: 256, 128>}, {pipeline_mode = #tpu.pipeline_mode<synchronous>, transform_indices = @transform_4, window_bounds = array<i64: 1, 128>}, {transform_indices = @transform_5, window_bounds = array<i64: 16, 128>}]} {
    %c0_i32 = arith.constant 0 : i32
    %0 = arith.cmpi eq, %arg1, %c0_i32 : i32
    %1 = arith.extui %0 : i1 to i32
    %c0_i32_0 = arith.constant 0 : i32
    %2 = arith.cmpi ne, %1, %c0_i32_0 : i32
    scf.if %2 {
      %cst_15 = arith.constant 0.000000e+00 : f32
      %19 = vector.broadcast %cst_15 : f32 to vector<16x128xf32>
      %c0_16 = arith.constant 0 : index
      %c0_17 = arith.constant 0 : index
      %20 = vector.load %arg8[%c0_16, %c0_17] : memref<16x128xf32, #tpu.memory_space<vmem>>, vector<16x128xf32>
      tpu.vector_store %arg8[%c0_16, %c0_17], %19 {strides = array<i32>} : memref<16x128xf32, #tpu.memory_space<vmem>>, vector<16x128xf32>,
    } else {
    }
    %c0 = arith.constant 0 : index
    %c0_1 = arith.constant 0 : index
    %3 = vector.load %arg2[%c0, %c0_1] : memref<16x128xf32, #tpu.memory_space<vmem>>, vector<16x128xf32>
    %c0_2 = arith.constant 0 : index
    %c0_3 = arith.constant 0 : index
    %4 = vector.load %arg3[%c0_2, %c0_3] : memref<128x256xf32, #tpu.memory_space<vmem>>, vector<128x256xf32>
    %cst = arith.constant dense<0.000000e+00> : vector<16x256xf32>
    %5 = tpu.matmul %3, %4, %cst {dimension_numbers = #tpu.dot_dimension_numbers<[1], [0], [0], [1], [0, 0, 1, 1], [], []>} : vector<16x128xf32>, vector<128x256xf32>, vector<16x256xf32> -> vector<16x256xf32>
    %c0_4 = arith.constant 0 : index
    %c0_5 = arith.constant 0 : index
    %6 = vector.load %arg4[%c0_4, %c0_5] : memref<1x256xf32, #tpu.memory_space<vmem>>, vector<1x256xf32>
    %7 = vector.broadcast %6 : vector<1x256xf32> to vector<16x256xf32>
    %8 = arith.addf %5, %7 : vector<16x256xf32>
    %cst_6 = arith.constant 0.000000e+00 : f32
    %9 = vector.broadcast %cst_6 : f32 to vector<16x256xf32>
    %10 = arith.maximumf %8, %9 : vector<16x256xf32>
    %c0_7 = arith.constant 0 : index
    %c0_8 = arith.constant 0 : index
    %11 = vector.load %arg8[%c0_7, %c0_8] : memref<16x128xf32, #tpu.memory_space<vmem>>, vector<16x128xf32>
    %c0_9 = arith.constant 0 : index
    %c0_10 = arith.constant 0 : index
    %12 = vector.load %arg5[%c0_9, %c0_10] : memref<256x128xf32, #tpu.memory_space<vmem>>, vector<256x128xf32>
    %cst_11 = arith.constant dense<0.000000e+00> : vector<16x128xf32>
    %13 = tpu.matmul %10, %12, %cst_11 {dimension_numbers = #tpu.dot_dimension_numbers<[1], [0], [0], [1], [0, 0, 1, 1], [], []>} : vector<16x256xf32>, vector<256x128xf32>, vector<16x128xf32> -> vector<16x128xf32>
    %14 = arith.addf %11, %13 : vector<16x128xf32>
    %c0_12 = arith.constant 0 : index
    %c0_13 = arith.constant 0 : index
    %15 = vector.load %arg8[%c0_12, %c0_13] : memref<16x128xf32, #tpu.memory_space<vmem>>, vector<16x128xf32>
    tpu.vector_store %arg8[%c0_12, %c0_13], %14 {strides = array<i32>} : memref<16x128xf32, #tpu.memory_space<vmem>>, vector<16x128xf32>,
    %c1_i32 = arith.constant 1 : i32
    %16 = arith.cmpi eq, %arg1, %c1_i32 : i32
    %17 = arith.extui %16 : i1 to i32
    %c0_i32_14 = arith.constant 0 : i32
    %18 = arith.cmpi ne, %17, %c0_i32_14 : i32
    scf.if %18 {
      %c0_15 = arith.constant 0 : index
      %c0_16 = arith.constant 0 : index
      %19 = vector.load %arg8[%c0_15, %c0_16] : memref<16x128xf32, #tpu.memory_space<vmem>>, vector<16x128xf32>
      %c0_17 = arith.constant 0 : index
      %c0_18 = arith.constant 0 : index
      %20 = vector.load %arg6[%c0_17, %c0_18] : memref<1x128xf32, #tpu.memory_space<vmem>>, vector<1x128xf32>
      %21 = vector.broadcast %20 : vector<1x128xf32> to vector<16x128xf32>
      %22 = arith.addf %19, %21 : vector<16x128xf32>
      %c0_19 = arith.constant 0 : index
      %c0_20 = arith.constant 0 : index
      %23 = vector.load %arg7[%c0_19, %c0_20] : memref<16x128xf32, #tpu.memory_space<vmem>>, vector<16x128xf32>
      tpu.vector_store %arg7[%c0_19, %c0_20], %22 {strides = array<i32>} : memref<16x128xf32, #tpu.memory_space<vmem>>, vector<16x128xf32>,
    } else {
    }
    return
  }
  func.func @transform_0(%arg0: i32, %arg1: i32) -> (i32, i32) {
    %c0_i32 = arith.constant 0 : i32
    %c0_i32_0 = arith.constant 0 : i32
    return %arg0, %c0_i32 : i32, i32
  }
  func.func @transform_1(%arg0: i32, %arg1: i32) -> (i32, i32) {
    %c0_i32 = arith.constant 0 : i32
    %c0_i32_0 = arith.constant 0 : i32
    return %c0_i32, %arg1 : i32, i32
  }
  func.func @transform_2(%arg0: i32, %arg1: i32) -> (i32, i32) {
    %c0_i32 = arith.constant 0 : i32
    %c0_i32_0 = arith.constant 0 : i32
    return %c0_i32, %arg1 : i32, i32
  }
  func.func @transform_3(%arg0: i32, %arg1: i32) -> (i32, i32) {
    %c0_i32 = arith.constant 0 : i32
    %c0_i32_0 = arith.constant 0 : i32
    return %arg1, %c0_i32 : i32, i32
  }
  func.func @transform_4(%arg0: i32, %arg1: i32) -> (i32, i32) {
    %c0_i32 = arith.constant 0 : i32
    %c0_i32_0 = arith.constant 0 : i32
    %c0_i32_1 = arith.constant 0 : i32
    return %c0_i32, %c0_i32_0 : i32, i32
  }
  func.func @transform_5(%arg0: i32, %arg1: i32) -> (i32, i32) {
    %c0_i32 = arith.constant 0 : i32
    %c0_i32_0 = arith.constant 0 : i32
    return %arg0, %c0_i32 : i32, i32
  }
}

</mosaic_0001>

<bundles_post_ra>
// kernel: feed_forward.1
= control target key start
LH: loop header
LB: loop body
LE: loop exit
PB: predicated region body
PF: predicated region fallthrough
CT: control target
= control target key end

     0   :  { %10 = vsyncpa [#allocation4], 0  ;;  %s1198_s0 = inlined_call_operand.hbm [shape: f32[16,128], index: 0, kind: input, shape index: {}]   ;;  %s1199_s1 = inlined_call_operand.hbm [shape: f32[128,512], index: 1, kind: input, shape index: {}]   ;;  %s1200_s2 = inlined_call_operand.vmem [shape: f32[1,512], index: 2, kind: input, shape index: {}]   ;;  %s1201_s3 = inlined_call_operand.hbm [shape: f32[512,128], index: 3, kind: input, shape index: {}]   ;;  %s1202_s4 = inlined_call_operand.vmem [shape: f32[1,128], index: 4, kind: input, shape index: {}]   ;;  %s1203_s5 = inlined_call_operand.hbm [shape: f32[16,128], index: 5, kind: output, shape index: {}]  }
   0x1   :  { %11 = vsyncpa [#allocation7], 0 }
   0x2   :  { %13 = vsyncpa [#allocation7 + $0x1], 0 }
   0x3   :  { %14 = vsyncpa [#allocation5], 0  ;;  %s977_s18 = smov 0   ;;  %s979_s19 = smov 0  }
   0x4   :  { %s981_s20 = smov 0   ;;  %s983_s21 = smov 0  }
   0x5   :  { %s985_s22 = smov 0   ;;  %s987_s23 = smov 0  }
   0x6 LB: > { %s29_s24 = sadd.s32 1, %s931_s22  ;;  %s65_s25 = sadd.s32 1, %s923_s20  ;;  %s935_s23 = sphi %s987_s23, %s20_s23   ;;  %s931_s22 = sphi %s985_s22, %s1212_s22   ;;  %s927_s21 = sphi %s983_s21, %s1211_s21   ;;  %s923_s20 = sphi %s981_s20, %s1210_s20   ;;  %s919_s19 = sphi %s979_s19, %s1209_s19   ;;  %s915_s18 = sphi %s977_s18, %s1208_s18  }
   0x7   : > { %p30_p0 = scmp.ge.s32.totalorder %s29_s24, 2  ;;  %p72_p1 = scmp.ne.s32.totalorder %s923_s20, %s919_s19 }
   0x8   : > { %p73_p2 = scmp.eq.s32.totalorder %s935_s23, 0  ;;  %p696_p4 = scmp.lt.s32.totalorder %s935_s23, 2 }
   0x9   : > { %s1214_s24 = smov (%p30_p0, %s29_s24), 0  ;;  %s221_s28 = sand.u32 1, %s935_s23  }
   0xa   : > { %p1014_p3 = por %p73_p2, %p72_p1  ;;  %s62_s27 = ssub.s32 %s931_s22, %s1214_s24 }
   0xb   : > { %p63_p5 = scmp.eq.s32.totalorder %s62_s27, 0  ;;  %s223_s29 = sand.u32 1, %s923_s20  }
   0xc   : > { %s670_s30 = sshll.u32 %s931_s22, 4  ;;  %s1027_s7 = sshll.u32 %s223_s29, 8 }
   0xd   : > { %s1025_s6 = scalar_select %p63_p5, %s923_s20, %s65_s25  }
   0xe   : > { %s230_s10 = scalar_lea.hbm %s1199_s1, %s670_s30  ;;  %s225_s12 = scalar_lea.vmem [#allocation6], %s1027_s7 }
   0xf   : > { %s231_s11 = sshll.u32 %s230_s10, 4  ;;  %s233_s13 = sshll.u32 %s225_s12, 4  ;;  %s232_s11 = int_to_ptr.hbm [resolvable:$true] %s231_s11  ;;  %s234_s13 = int_to_ptr.vmem [resolvable:$true] %s233_s13 }
  0x10   : > { %p1037_p6 = pnand %p696_p4, %p1014_p3  ;;  %s1041_s15 = scalar_lea.sflag [#allocation7], %s221_s28 }
  0x11   : > { %s937_s16 = smov 512   ;;  %s938_s17 = smov 256  }
  0x12   : > { %s939_s25 = smov 16   ;;  %s1047_s27 = sadd.s32 4294967295, %s935_s23  }
  0x13   : > { %691 = dma.hbm_to_vmem [thread:$0]  (!%p1037_p6), %s232_s11, 4096, %s234_s13, %s1041_s15, %s937_s16, %s938_s17, %s939_s25  }
  0x14   : > { %p78_p7 = scmp.ne.s32.totalorder %s919_s19, %s915_s18  ;;  %p79_p8 = scmp.eq.s32.totalorder %s1047_s27, 0 }
  0x15   : > { %p650_p9 = scmp.ge.s32.totalorder %s935_s23, 1  ;;  %p188_p10 = scmp.lt.s32.totalorder %s935_s23, 3 }
  0x16   : > { %p1056_p11 = por %p79_p8, %p78_p7  ;;  %s202_s30 = sshll.u32 %s1198_s0, 4  ;;  %s203_s30 = int_to_ptr.hbm [resolvable:$true] %s202_s30 }
  0x17   : > { %p1063_p12 = pnand %p650_p9, %p188_p10  ;;  %s940_s18 = smov [#allocation3]  }
  0x18   : > { %s204_s9 = sshll.u32 %s940_s18, 4  ;;  %s671_s10 = sshll.u32 %s931_s22, 8  ;;  %s205_s9 = int_to_ptr.vmem [resolvable:$true] %s204_s9 }
  0x19   : > { %p684_p13 = pneg %p1063_p12  ;;  %s255_s11 = scalar_lea.vmem [#allocation8], %s1027_s7 }
  0x1a   : > { %s263_s12 = sshll.u32 %s255_s11, 4  ;;  %s260_s17 = scalar_lea.hbm %s1201_s3, %s671_s10  ;;  %s264_s12 = int_to_ptr.vmem [resolvable:$true] %s263_s12 }
  0x1b   : > { %p685_p0 = pnand %p684_p13, %p79_p8  ;;  %s941_s25 = smov 128  }
  0x1c   : > { %s942_s28 = smov 8   ;;  %s261_s29 = sshll.u32 %s260_s17, 4  ;;  %s262_s29 = int_to_ptr.hbm [resolvable:$true] %s261_s29 }
  0x1d   : > { %687 = dma.hbm_to_vmem [thread:$0]  (!%p685_p0), %s203_s30, 256, %s205_s9, [#allocation4], %s941_s25, %s941_s25, %s942_s28  }
  0x1e   : > { %694 = dma.hbm_to_vmem [thread:$0]  (!%p1037_p6), %s262_s29, 4096, %s264_s12, %s1041_s15, %s941_s25, %s941_s25, %s942_s28  }
  0x1f   : > { %275 = sbr.rel (%p1063_p12) target bundleno = 375 (0x177), region = 40 }
  0x24   : > { %902 = dma.done.wait (%p79_p8), [#allocation4], 256  }
  0x25   : > { %904 = vsyncadd (%p79_p8), [#allocation4], 4294967040  ;;  %s282_s7 = sand.u32 1, %s1047_s27   ;;  %s284_s18 = sand.u32 1, %s919_s19  }
  0x26   : > { %s661_s30 = sshll.u32 %s284_s18, 8  ;;  %s283_s9 = scalar_lea.sflag [#allocation7], %s282_s7 }
  0x27   : > { %s1087_s10 = scalar_lea.vmem [#allocation6], %s661_s30 }
  0x28   : > { %906 = dma.done.wait (%p1056_p11), %s283_s9, 8192  }
  0x29   : > { %908 = vsyncadd (%p1056_p11), %s283_s9, 4294959104  ;;  %s663_s14 = sshll.u32 %s927_s21, 1  ;;  %s1100_s12 = scalar_lea.vmem [#allocation8], %s661_s30 }
  0x2a   : > { %p331_p1 = scmp.lt.s32.totalorder %s663_s14, 3  ;;  %p664_p2 = scmp.ne.s32.totalorder %s927_s21, 0 }
  0x2c   : > { %s1216_s14 = smov (!%p331_p1, %s663_s14), 3  ;;  %340 = sbr.rel (%p664_p2) target bundleno = 52 (0x34), region = 56 }
  0x2d   : > { %s333_s11 = scalar_lea.vmem %s1200_s2, %s1216_s14 }
  0x31   : > { %v943_v0 = vmov 0.0  }
  0x32   : > { %341 = vst [vmem:[#allocation2] sm:$0xff] %v943_v0 }
  0x33   : > { %342 = vst [vmem:[#allocation2 + $0x8] sm:$0xff] %v943_v0 }
  0x34 PF: > { %v375_v1 = vld [vmem:[%s1087_s10 + $0xf0] sm:$0xff]  ;;  %v376_v2 = vld [vmem:[%s1087_s10 + $0xf8] sm:$0xff]  ;;  %v373_v3 = vld [vmem:[%s1087_s10 + $0xe0] sm:$0xff]  ;;  %p665_p3 = scmp.ne.s32.totalorder %s927_s21, 1 }
  0x35   : > { %383 = vmatpush.msra.mxu0 %v375_v1  ;;  %406 = vmatpush.msra.mxu1 %v376_v2  ;;  %v374_v4 = vld [vmem:[%s1087_s10 + $0xe8] sm:$0xff]  ;;  %v371_v5 = vld [vmem:[%s1087_s10 + $0xd0] sm:$0xff]  ;;  %v372_v6 = vld [vmem:[%s1087_s10 + $0xd8] sm:$0xff] }
  0x36   : > { %v369_v7 = vld [vmem:[%s1087_s10 + $0xc0] sm:$0xff]  ;;  %v370_v8 = vld [vmem:[%s1087_s10 + $0xc8] sm:$0xff]  ;;  %v367_v9 = vld [vmem:[%s1087_s10 + $0xb0] sm:$0xff] }
  0x37   : > { %384 = vmatpush.msra.mxu0 %v373_v3  ;;  %407 = vmatpush.msra.mxu1 %v374_v4  ;;  %v368_v10 = vld [vmem:[%s1087_s10 + $0xb8] sm:$0xff]  ;;  %v365_v11 = vld [vmem:[%s1087_s10 + $0xa0] sm:$0xff]  ;;  %v366_v12 = vld [vmem:[%s1087_s10 + $0xa8] sm:$0xff] }
  0x38   : > { %v363_v13 = vld [vmem:[%s1087_s10 + $0x90] sm:$0xff]  ;;  %v364_v14 = vld [vmem:[%s1087_s10 + $0x98] sm:$0xff]  ;;  %v361_v15 = vld [vmem:[%s1087_s10 + $0x80] sm:$0xff] }
  0x39   : > { %385 = vmatpush.msra.mxu0 %v371_v5  ;;  %408 = vmatpush.msra.mxu1 %v372_v6  ;;  %v450_v16 = vld [vmem:[%s1100_s12 + $0x78] sm:$0xff]  ;;  %v362_v18 = vld [vmem:[%s1087_s10 + $0x88] sm:$0xff]  ;;  %v449_v19 = vld [vmem:[%s1100_s12 + $0x70] sm:$0xff] }
  0x3a   : > { %v466_v17 = vld [vmem:[%s1100_s12 + $0xf8] sm:$0xff]  ;;  %467 = vmatpush.msra.mxu2 %v450_v16  ;;  %v465_v20 = vld [vmem:[%s1100_s12 + $0xf0] sm:$0xff]  ;;  %v448_v21 = vld [vmem:[%s1100_s12 + $0x68] sm:$0xff] }
  0x3b   : > { %386 = vmatpush.msra.mxu0 %v369_v7  ;;  %409 = vmatpush.msra.mxu1 %v370_v8  ;;  %v464_v22 = vld [vmem:[%s1100_s12 + $0xe8] sm:$0xff]  ;;  %v359_v23 = vld [vmem:[%s1087_s10 + $0x70] sm:$0xff]  ;;  %v360_v24 = vld [vmem:[%s1087_s10 + $0x78] sm:$0xff] }
  0x3c   : > { %490 = vmatpush.msra.mxu3 %v466_v17  ;;  %468 = vmatpush.msra.mxu2 %v449_v19  ;;  %v447_v25 = vld [vmem:[%s1100_s12 + $0x60] sm:$0xff]  ;;  %v358_v28 = vld [vmem:[%s1087_s10 + $0x68] sm:$0xff]  ;;  %v446_v29 = vld [vmem:[%s1100_s12 + $0x58] sm:$0xff] }
  0x3d   : > { %387 = vmatpush.msra.mxu0 %v367_v9  ;;  %410 = vmatpush.msra.mxu1 %v368_v10  ;;  %v463_v26 = vld [vmem:[%s1100_s12 + $0xe0] sm:$0xff]  ;;  %v462_v30 = vld [vmem:[%s1100_s12 + $0xd8] sm:$0xff]  ;;  %v355_v31 = vld [vmem:[%s1087_s10 + $0x50] sm:$0xff] }
  0x3e   : > { %491 = vmatpush.msra.mxu3 %v465_v20  ;;  %v357_v27 = vld [vmem:[%s1087_s10 + $0x60] sm:$0xff]  ;;  %469 = vmatpush.msra.mxu2 %v448_v21  ;;  %v356_v32 = vld [vmem:[%s1087_s10 + $0x58] sm:$0xff]  ;;  %v445_v33 = vld [vmem:[%s1100_s12 + $0x50] sm:$0xff] }
  0x3f   : > { %388 = vmatpush.msra.mxu0 %v365_v11  ;;  %411 = vmatpush.msra.mxu1 %v366_v12  ;;  %v461_v34 = vld [vmem:[%s1100_s12 + $0xd0] sm:$0xff]  ;;  %v353_v35 = vld [vmem:[%s1087_s10 + $0x40] sm:$0xff]  ;;  %v354_v36 = vld [vmem:[%s1087_s10 + $0x48] sm:$0xff] }
  0x40   : > { %492 = vmatpush.msra.mxu3 %v464_v22  ;;  %470 = vmatpush.msra.mxu2 %v447_v25  ;;  %v444_v37 = vld [vmem:[%s1100_s12 + $0x48] sm:$0xff]  ;;  %v351_v39 = vld [vmem:[%s1087_s10 + $0x30] sm:$0xff]  ;;  %v352_v40 = vld [vmem:[%s1087_s10 + $0x38] sm:$0xff] }
  0x41   : > { %389 = vmatpush.msra.mxu0 %v363_v13  ;;  %412 = vmatpush.msra.mxu1 %v364_v14  ;;  %v460_v38 = vld [vmem:[%s1100_s12 + $0xc8] sm:$0xff]  ;;  %v443_v41 = vld [vmem:[%s1100_s12 + $0x40] sm:$0xff]  ;;  %v442_v45 = vld [vmem:[%s1100_s12 + $0x38] sm:$0xff] }
  0x42   : > { %493 = vmatpush.msra.mxu3 %v463_v26  ;;  %471 = vmatpush.msra.mxu2 %v446_v29  ;;  %v459_v42 = vld [vmem:[%s1100_s12 + $0xc0] sm:$0xff]  ;;  %v350_v44 = vld [vmem:[%s1087_s10 + $0x28] sm:$0xff]  ;;  %v458_v46 = vld [vmem:[%s1100_s12 + $0xb8] sm:$0xff] }
  0x43   : > { %390 = vmatpush.msra.mxu0 %v361_v15  ;;  %413 = vmatpush.msra.mxu1 %v362_v18  ;;  %v349_v43 = vld [vmem:[%s1087_s10 + $0x20] sm:$0xff]  ;;  %v347_v47 = vld [vmem:[%s1087_s10 + $0x10] sm:$0xff]  ;;  %v348_v48 = vld [vmem:[%s1087_s10 + $0x18] sm:$0xff] }
  0x44   : > { %494 = vmatpush.msra.mxu3 %v462_v30  ;;  %472 = vmatpush.msra.mxu2 %v445_v33  ;;  %v441_v49 = vld [vmem:[%s1100_s12 + $0x30] sm:$0xff]  ;;  %v345_v51 = vld [vmem:[%s1087_s10] sm:$0xff]  ;;  %v346_v52 = vld [vmem:[%s1087_s10 + $0x8] sm:$0xff] }
  0x45   : > { %391 = vmatpush.msra.mxu0 %v359_v23  ;;  %414 = vmatpush.msra.mxu1 %v360_v24  ;;  %v457_v50 = vld [vmem:[%s1100_s12 + $0xb0] sm:$0xff]  ;;  %v440_v54 = vld [vmem:[%s1100_s12 + $0x28] sm:$0xff]  ;;  %v439_v56 = vld [vmem:[%s1100_s12 + $0x20] sm:$0xff] }
  0x46   : > { %495 = vmatpush.msra.mxu3 %v461_v34  ;;  %473 = vmatpush.msra.mxu2 %v444_v37  ;;  %v343_v53 = vld [vmem:[#allocation3] sm:$0xff]  ;;  %v456_v55 = vld [vmem:[%s1100_s12 + $0xa8] sm:$0xff]  ;;  %v455_v57 = vld [vmem:[%s1100_s12 + $0xa0] sm:$0xff] }
  0x47   : > { %392 = vmatpush.msra.mxu0 %v357_v27  ;;  %415 = vmatpush.msra.mxu1 %v358_v28  ;;  %v438_v58 = vld [vmem:[%s1100_s12 + $0x18] sm:$0xff]  ;;  %v437_v61 = vld [vmem:[%s1100_s12 + $0x10] sm:$0xff]  ;;  %v436_v63 = vld [vmem:[%s1100_s12 + $0x8] sm:$0xff] }
  0x48   : > { %496 = vmatpush.msra.mxu3 %v460_v38  ;;  %474 = vmatpush.msra.mxu2 %v443_v41  ;;  %v454_v59 = vld [vmem:[%s1100_s12 + $0x98] sm:$0xff]  ;;  %v453_v62 = vld [vmem:[%s1100_s12 + $0x90] sm:$0xff]  ;;  %v452_v0 = vld [vmem:[%s1100_s12 + $0x88] sm:$0xff] }
  0x49   : > { %393 = vmatpush.msra.mxu0 %v355_v31  ;;  %416 = vmatpush.msra.mxu1 %v356_v32  ;;  %v344_v60 = vld [vmem:[#allocation3 + $0x8] sm:$0xff]  ;;  %v435_v1 = vld [vmem:[%s1100_s12] sm:$0xff]  ;;  %v434_v24 = vld [vmem:[#allocation2 + $0x8] sm:$0xff] }
  0x4a   : > { %497 = vmatpush.msra.mxu3 %v459_v42  ;;  %475 = vmatpush.msra.mxu2 %v442_v45  ;;  %v451_v2 = vld [vmem:[%s1100_s12 + $0x80] sm:$0xff] }
  0x4b   : > { %394 = vmatpush.msra.mxu0 %v353_v35  ;;  %417 = vmatpush.msra.mxu1 %v354_v36  ;;  %v377_v3 = vld [vmem:[%s333_s11] sm:$0x3] }
  0x4c   : > { %498 = vmatpush.msra.mxu3 %v458_v46  ;;  %476 = vmatpush.msra.mxu2 %v441_v49  ;;  %v379_v4 = vperm.slane %v377_v3, 0  ;;  %v380_v5 = vperm.slane %v377_v3, 1  ;;  %v433_v19 = vld [vmem:[#allocation2] sm:$0xff] }
  0x4d   : > { %395 = vmatpush.msra.mxu0 %v351_v39  ;;  %418 = vmatpush.msra.mxu1 %v352_v40 }
  0x4e   : > { %499 = vmatpush.msra.mxu3 %v457_v50  ;;  %477 = vmatpush.msra.mxu2 %v440_v54 }
  0x4f   : > { %396 = vmatpush.msra.mxu0 %v349_v43  ;;  %419 = vmatpush.msra.mxu1 %v350_v44 }
  0x50   : > { %500 = vmatpush.msra.mxu3 %v456_v55  ;;  %478 = vmatpush.msra.mxu2 %v439_v56 }
  0x51   : > { %397 = vmatpush.msra.mxu0 %v347_v47  ;;  %420 = vmatpush.msra.mxu1 %v348_v48 }
  0x52   : > { %501 = vmatpush.msra.mxu3 %v455_v57  ;;  %479 = vmatpush.msra.mxu2 %v438_v58 }
  0x53   : > { %398 = vmatpush.msra.mxu0 %v345_v51  ;;  %421 = vmatpush.msra.mxu1 %v346_v52 }
  0x54   : > { %399 = vmatmul.f32.vlgmr.msra.gmra.mxu0 %v343_v53  ;;  %422 = vmatmul.f32.vlgmr.msra.gmra.mxu1 %v343_v53 }
  0x55   : > { %502 = vmatpush.msra.mxu3 %v454_v59  ;;  %480 = vmatpush.msra.mxu2 %v437_v61 }
  0x57   : > { %503 = vmatpush.msra.mxu3 %v453_v62  ;;  %481 = vmatpush.msra.mxu2 %v436_v63 }
  0x59   : > { %504 = vmatpush.msra.mxu3 %v452_v0  ;;  %482 = vmatpush.msra.mxu2 %v435_v1 }
  0x5b   : > { %505 = vmatpush.msra.mxu3 %v451_v2 }
  0x5c   : > { %402 = vmatmul.f32.gmra.mxu0 %v344_v60  ;;  %425 = vmatmul.f32.gmra.mxu1 %v344_v60 }
  0xd1   : > { %v400_v6 = vpop.f32.mrf.mxu0  ;;  %v423_v7 = vpop.f32.mrf.mxu1 }
  0xd2   : > { %v401_v8 = vadd.f32 %v400_v6, %v379_v4  ;;  %v424_v9 = vadd.f32 %v423_v7, %v380_v5 }
  0xd4   : > { %v429_v10 = vmax.f32 %v401_v8, 0.0  ;;  %v430_v11 = vmax.f32 %v424_v9, 0.0 }
  0xd6   : > { %483 = vmatmul.f32.vlgmr.msra.gmra.mxu2 %v429_v10  ;;  %506 = vmatmul.f32.vlgmr.msra.gmra.mxu3 %v430_v11 }
  0xd9   : > { %v403_v12 = vpop.f32.mrf.mxu0  ;;  %v426_v13 = vpop.f32.mrf.mxu1 }
  0xda   : > { %v404_v14 = vadd.f32 %v403_v12, %v379_v4  ;;  %v427_v15 = vadd.f32 %v426_v13, %v380_v5 }
  0xdc   : > { %v431_v16 = vmax.f32 %v404_v14, 0.0  ;;  %v432_v17 = vmax.f32 %v427_v15, 0.0 }
  0xde   : > { %486 = vmatmul.f32.gmra.mxu2 %v431_v16  ;;  %509 = vmatmul.f32.gmra.mxu3 %v432_v17 }
 0x159   : > { %v484_v18 = vpop.f32.mrf.mxu2  ;;  %v507_v20 = vpop.f32.mrf.mxu3 }
 0x15a   : > { %v508_v21 = vadd.f32 %v507_v20, %v484_v18 }
 0x15c   : > { %v513_v22 = vadd.f32 %v508_v21, %v433_v19 }
 0x15e   : > { %515 = vst [vmem:[#allocation2] sm:$0xff] %v513_v22 }
 0x161   : > { %v487_v23 = vpop.f32.mrf.mxu2  ;;  %v510_v25 = vpop.f32.mrf.mxu3 }
 0x162   : > { %v511_v26 = vadd.f32 %v510_v25, %v487_v23  ;;  %520 = sbr.rel (%p665_p3) target bundleno = 369 (0x171), region = 60 }
 0x164   : > { %v514_v27 = vadd.f32 %v511_v26, %v434_v24 }
 0x166   : > { %516 = vst [vmem:[#allocation2 + $0x8] sm:$0xff] %v514_v27 }
 0x167   : > { %v521_v28 = vld [vmem:[#allocation2] sm:$0xff] }
 0x168   : > { %v758_v29 = vld [vmem:[%s1202_s4] ss:$0 sm:$0xff] }
 0x169   : > { %v527_v31 = vadd.f32 %v758_v29, %v521_v28 }
 0x16b   : > { %529 = vst [vmem:[#allocation9] sm:$0xff] %v527_v31 }
 0x16d   : > { %v522_v30 = vld [vmem:[#allocation2 + $0x8] sm:$0xff] }
 0x16e   : > { %v528_v32 = vadd.f32 %v758_v29, %v522_v30 }
 0x170   : > { %530 = vst [vmem:[#allocation9 + $0x8] sm:$0xff] %v528_v32 }
 0x171 PF: > { %p698_p4 = scmp.eq.s32.totalorder %s1047_s27, 1  ;;  %s541_s29 = sshll.u32 %s1203_s5, 4  ;;  %s542_s29 = int_to_ptr.hbm [resolvable:$true] %s541_s29 }
 0x172   : > { %s944_s7 = smov [#allocation9]   ;;  %s945_s18 = smov 128  }
 0x173   : > { %s539_s21 = sshll.u32 %s944_s7, 4  ;;  %s946_s30 = smov 8   ;;  %s540_s21 = int_to_ptr.vmem [resolvable:$true] %s539_s21 }
 0x174   : > { %681 = dma.vmem_to_hbm [thread:$0]  (%p698_p4), %s540_s21, 256, %s542_s29, [#allocation5], %s945_s18, %s945_s18, %s946_s30  }
 0x175   : > { %910 = dma.done.wait (%p698_p4), [#allocation5], 256  }
 0x176   : > { %912 = vsyncadd (%p698_p4), [#allocation5], 4294967040 }
 0x177 PF: > { %s20_s23 = sadd.s32 1, %s935_s23   ;;  %s1208_s18 = smov %s919_s19 }
 0x178   : > { %p17_p5 = scmp.ge.s32.totalorder %s20_s23, 4   ;;  %s1209_s19 = smov %s923_s20 }
 0x179   : > { %s1210_s20 = smov %s1025_s6  ;;  %s1211_s21 = smov %s931_s22 }
 0x17a   : > { %s1212_s22 = smov %s1214_s24  ;;  %19 = sbr.rel (!%p17_p5) target bundleno = 6 (0x6), region = 106 }
 0x17f   :  { %558 = vsyncpa [#allocation4], 1 }
 0x180   :  { %560 = vsyncpa [#allocation4 + $0x1], 1 }
 0x181   :  { %561 = vsyncpa [#allocation7], 1 }
 0x182   :  { %563 = vsyncpa [#allocation7 + $0x1], 1 }
 0x183   :  { %564 = vsyncpa [#allocation5], 1 }
 0x184   :  { %566 = vsyncpa [#allocation5 + $0x1], 1 }

</bundles_post_ra>
